<compile_context>
chip_gen: v5e
topology: v5e:2x2
jax: 0.10.0
libtpu: 0.0.40
codegen_flags: <defaults>
</compile_context>

<pallas_src>
import functools

import numpy as np
import jax
import jax.numpy as jnp
from jax import lax
from jax.experimental import pallas as pl
from jax.experimental.pallas import tpu as pltpu

LN_EPS = 1e-5                    # PyTorch nn.LayerNorm default eps
VMEM_LIMIT_BYTES = 48 << 20      # explicit scoped-VMEM limit; safe on v5e/v6e/v7x
ATTN_BLOCK_BUDGET = 16 << 20     # per-step input block budget (~32 MiB double-buffered)


def _mxu_precision(dtype):
    # f32 inputs: full-precision MXU passes so the tight f32 reference check
    # (and the AFPS argmax selection) are reproduced exactly.  bf16: native.
    return lax.Precision.HIGHEST if jnp.dtype(dtype) == jnp.dtype(jnp.float32) \
        else lax.Precision.DEFAULT


def _choose_graph_tile(G, bytes_per_graph, budget):
    tg = int(budget // max(int(bytes_per_graph), 1))
    tg = max(1, min(tg, G))
    if G >= 2:
        tg = max(1, min(tg, G // 2))     # keep >=2 grid steps (v7x: 2 TensorCores)
    while G % tg:
        tg -= 1
    return tg


def _choose_col_tile(N, HN, itemsize, budget):
    # Tile the j (column) axis only when a single graph's attention block does
    # not fit the budget and N is 128-aligned; otherwise take the full extent.
    if HN * N * itemsize <= budget or N % 128 != 0:
        return N
    tn = 128
    while tn * 2 <= N and N % (tn * 2) == 0 and HN * tn * 2 * itemsize <= budget:
        tn *= 2
    return tn


def _choose_red_tile(HN, tn, itemsize, budget):
    # Tile the H*N contraction axis only when the (HN, tn) attention block still
    # exceeds the budget and HN is 128-aligned (lane constraint on the mask row).
    if HN * tn * itemsize <= budget or HN % 128 != 0:
        return HN
    tk = 128
    while tk * 2 <= HN and HN % (tk * 2) == 0 and tk * 2 * tn * itemsize <= budget:
        tk *= 2
    return tk


# ----------------------------------------------------------------------------
# Kernel 1: masked attention score reduction (MXU matvec per graph)
#   scores[g, j] = sum_i mask[g, i] * mean_h attn[g, h, i, j]
# The contraction (H*N) axis is the trailing grid axis; the tiny f32 output
# block stays resident and accumulates (extent 1 in the common case).
# ----------------------------------------------------------------------------
def _score_kernel(mask_ref, attn_ref, out_ref, *, inv_h, precision):
    # mask_ref: (TG, 1, TK) native dtype, 0/1 replicated over heads
    # attn_ref: (TG, TK, TN) native dtype
    # out_ref : (TG, 1, TN)  f32 (resident across the reduction axis)
    @pl.when(pl.program_id(2) == 0)
    def _():
        out_ref[...] = jnp.zeros_like(out_ref)
    part = jnp.einsum('gom,gmn->gon', mask_ref[...], attn_ref[...],
                      preferred_element_type=jnp.float32, precision=precision)
    out_ref[...] += part * inv_h        # fold the 1/H onto the tiny f32 result


def masked_attn_scores(attn, mask):
    """attn: (G, H, N, N) native dtype; mask: (G, N) 0/1 float -> (G, N) f32."""
    G, H, N, _ = attn.shape
    HN = H * N
    itemsize = jnp.dtype(attn.dtype).itemsize

    attn2 = attn.reshape(G, HN, N)                                    # free reshape
    mask_row = jnp.tile(mask.astype(attn.dtype), (1, H))[:, None, :]  # (G, 1, HN), 0/1 exact

    tg = _choose_graph_tile(G, HN * N * itemsize, ATTN_BLOCK_BUDGET)
    tn = _choose_col_tile(N, HN, itemsize, ATTN_BLOCK_BUDGET)
    tk = _choose_red_tile(HN, tn, itemsize, ATTN_BLOCK_BUDGET)
    grid = (G // tg, N // tn, HN // tk)                # reduction axis last

    kernel = functools.partial(_score_kernel, inv_h=1.0 / H,
                               precision=_mxu_precision(attn.dtype))
    out = pl.pallas_call(
        kernel,
        out_shape=jax.ShapeDtypeStruct((G, 1, N), jnp.float32),
        grid=grid,
        in_specs=[
            pl.BlockSpec((tg, 1, tk), lambda g, j, r: (g, 0, r)),
            pl.BlockSpec((tg, tk, tn), lambda g, j, r: (g, r, j)),
        ],
        out_specs=pl.BlockSpec((tg, 1, tn), lambda g, j, r: (g, 0, j)),
        compiler_params=pltpu.CompilerParams(
            dimension_semantics=("parallel", "parallel", "arbitrary"),
            vmem_limit_bytes=VMEM_LIMIT_BYTES),
    )(mask_row, attn2)
    return out[:, 0, :]                                               # (G, N) f32


# ----------------------------------------------------------------------------
# Kernel 2: weighted mean over selected nodes (MXU matvec) + LayerNorm
# ----------------------------------------------------------------------------
def _pool_ln_kernel(x_ref, w_ref, ic_ref, g_ref, b_ref, out_ref, *, precision):
    # x_ref: (TG, N, D) native   w_ref: (TG, 1, N) native 0/1
    # ic_ref: (TG, 1, 1) f32 (1/count)   g_ref/b_ref: (1, D) f32
    # out_ref: (TG, 1, D) in x dtype
    pooled = jnp.einsum('gon,gnd->god', w_ref[...], x_ref[...],
                        preferred_element_type=jnp.float32, precision=precision)
    pooled = pooled * ic_ref[...]                         # weighted mean, f32
    mu = jnp.mean(pooled, axis=-1, keepdims=True)
    var = jnp.mean((pooled - mu) ** 2, axis=-1, keepdims=True)
    y = (pooled - mu) * lax.rsqrt(var + LN_EPS)
    out_ref[...] = (y * g_ref[...] + b_ref[...]).astype(out_ref.dtype)


def pooled_layernorm(x, w, count, gamma, beta):
    """x: (G, N, D) native dtype; w: (G, N) 0/1; count: (G,) -> (G, D)."""
    G, N, D = x.shape
    itemsize = jnp.dtype(x.dtype).itemsize
    w_row = w.astype(x.dtype)[:, None, :]                       # (G, 1, N), 0/1 exact
    # count == 0 (fully-padded graph) -> inf -> NaN, same as the reference.
    inv_cnt = (1.0 / count.astype(jnp.float32)).reshape(G, 1, 1)

    tg = _choose_graph_tile(G, N * D * itemsize, ATTN_BLOCK_BUDGET)
    kernel = functools.partial(_pool_ln_kernel, precision=_mxu_precision(x.dtype))
    out = pl.pallas_call(
        kernel,
        out_shape=jax.ShapeDtypeStruct((G, 1, D), x.dtype),
        grid=(G // tg,),
        in_specs=[
            pl.BlockSpec((tg, N, D), lambda g: (g, 0, 0)),
            pl.BlockSpec((tg, 1, N), lambda g: (g, 0, 0)),
            pl.BlockSpec((tg, 1, 1), lambda g: (g, 0, 0)),
            pl.BlockSpec((1, D), lambda g: (0, 0)),
            pl.BlockSpec((1, D), lambda g: (0, 0)),
        ],
        out_specs=pl.BlockSpec((tg, 1, D), lambda g: (g, 0, 0)),
        compiler_params=pltpu.CompilerParams(
            dimension_semantics=("parallel",),
            vmem_limit_bytes=VMEM_LIMIT_BYTES),
    )(x, w_row, inv_cnt, gamma, beta)
    return out[:, 0, :]                                         # (G, D)


# ----------------------------------------------------------------------------
# AFPS greedy selection (sequential / data-dependent) -- plain JAX glue.
# Reproduces the reference exactly, including the fact that the returned
# indices live in the mask-compacted index space but are later applied to the
# *full* node axis of x (as in the original PyTorch code).
# ----------------------------------------------------------------------------
def afps_select(scores, dist, mask, k):
    # scores: (N,) column sums over masked rows; dist: (N, N); mask: (N,) bool
    N = mask.shape[0]
    m_count = jnp.sum(mask.astype(jnp.int32))
    order = jnp.argsort(jnp.logical_not(mask))          # stable: valid nodes first
    scores_c = scores[order]                            # compacted scores
    dist_c = dist[order][:, order]                      # compacted dist
    pos = jnp.arange(N)
    valid = pos < m_count
    neg_inf = jnp.float32(-jnp.inf)
    max_dist = jnp.max(jnp.where(valid[:, None] & valid[None, :], dist_c, neg_inf))
    max_score = jnp.max(jnp.where(valid, scores_c, neg_inf))
    dist_n = dist_c / max_dist + scores_c[:, None] / max_score * 0.1

    sol = jnp.zeros((k,), jnp.int32)                    # sol[0] = 0 (first valid node)
    in_sol = jnp.zeros((N,), bool).at[0].set(True)
    min_d = dist_n[:, 0]

    def body(t, carry):
        sol, in_sol, min_d = carry
        cand = jnp.where(valid & jnp.logical_not(in_sol), min_d, neg_inf)
        c = jnp.argmax(cand).astype(jnp.int32)          # ties -> smallest idx (matches torch)
        sol = sol.at[t].set(c)
        in_sol = in_sol.at[c].set(True)
        min_d = jnp.minimum(min_d, dist_n[:, c])
        return sol, in_sol, min_d

    sol, _, _ = lax.fori_loop(1, k, body, (sol, in_sol, min_d))
    return sol                                          # (k,) int32 indices


# ----------------------------------------------------------------------------
# GraphPool module
# ----------------------------------------------------------------------------
class GraphPool:
    def __init__(self, graph_pooling, hidden_dim, afps_k, use_super_node):
        self.graph_pooling = graph_pooling
        self.afps_k = afps_k
        self.use_super_node = use_super_node
        # deterministic LayerNorm params (PyTorch default is ones/zeros; use
        # slightly varied values so the affine transform is exercised)
        d = hidden_dim
        self.gamma = (1.0 + 0.01 * jnp.arange(d, dtype=jnp.float32)).reshape(1, d)
        self.beta = (0.005 * jnp.arange(d, dtype=jnp.float32)).reshape(1, d)

    def _afps_weights(self, batch_data, attn, N):
        mask = batch_data['x_mask'].astype(jnp.float32)          # (G, N)
        mask_b = mask.astype(bool)
        scores = masked_attn_scores(attn, mask)                  # (G, N) f32, native-dtype attn
        dist = batch_data['spatial_pos'].astype(jnp.float32)     # (G, N, N)
        k = self.afps_k
        sol = jax.vmap(lambda s, d, m: afps_select(s, d, m, k))(scores, dist, mask_b)  # (G, k)
        sel = jax.vmap(lambda idx: jnp.zeros((N,), jnp.float32).at[idx].set(1.0))(sol)
        use_afps = jnp.sum(mask_b, axis=-1) > k
        return jnp.where(use_afps[:, None], sel, mask)           # (G, N) 0/1 weights

    def __call__(self, x, batch_data, attn):
        G, N, D = x.shape
        if self.use_super_node:
            return x[:, 0, :]
        if self.graph_pooling == 'afps':
            w = self._afps_weights(batch_data, attn, N)          # (G, N) 0/1
            count = jnp.sum(w, axis=-1)                          # k or #valid nodes
            return pooled_layernorm(x, w, count, self.gamma, self.beta)
        # TODO(synk): 'center_node' and 'mean' pooling are plain gathers /
        # segment means with no interesting hot path; not kernelized here.
        raise NotImplementedError('please input correct pool methods')


# ----------------------------------------------------------------------------
# Pure-JAX reference (same AFPS glue, jnp reductions instead of kernels)
# ----------------------------------------------------------------------------
def reference(x, batch_data, attn, pool):
    mask = batch_data['x_mask'].astype(jnp.float32)
    mask_b = mask.astype(bool)
    G, N, D = x.shape
    mh = jnp.mean(attn, axis=1)                                  # (G, N, N)
    scores = jnp.sum(mh * mask[:, :, None], axis=1)              # (G, N)
    dist = batch_data['spatial_pos'].astype(jnp.float32)
    sol = jax.vmap(lambda s, d, m: afps_select(s, d, m, pool.afps_k))(scores, dist, mask_b)
    sel = jax.vmap(lambda idx: jnp.zeros((N,), jnp.float32).at[idx].set(1.0))(sol)
    use_afps = jnp.sum(mask_b, axis=-1) > pool.afps_k
    w = jnp.where(use_afps[:, None], sel, mask)
    pooled = jnp.sum(x * w[..., None], axis=1) / jnp.sum(w, axis=1, keepdims=True)
    mu = jnp.mean(pooled, axis=-1, keepdims=True)
    var = jnp.mean((pooled - mu) ** 2, axis=-1, keepdims=True)
    y = (pooled - mu) * lax.rsqrt(var + LN_EPS)
    return y * pool.gamma + pool.beta


if __name__ == "__main__":
    G, H, N, D, K = 2, 2, 16, 32, 5
    key = jax.random.PRNGKey(0)
    k1, k2, k3 = jax.random.split(key, 3)

    x = jax.random.normal(k1, (G, N, D), jnp.float32)
    attn = jax.nn.softmax(jax.random.normal(k2, (G, H, N, N), jnp.float32), axis=-1)
    sp = jax.random.randint(k3, (G, N, N), 1, 8)
    sp = jnp.minimum(sp, jnp.swapaxes(sp, -1, -2)).astype(jnp.float32)
    sp = sp * (1.0 - jnp.eye(N, dtype=jnp.float32))[None]        # zero diagonal

    # graph 0: 12 valid nodes (> k -> AFPS branch); graph 1: 4 valid (<= k -> masked mean)
    mask = jnp.zeros((G, N), jnp.float32).at[0, :12].set(1.0).at[1, :4].set(1.0)
    batch_data = {'x_mask': mask, 'spatial_pos': sp}

    pool = GraphPool('afps', hidden_dim=D, afps_k=K, use_super_node=False)

    # f32 path: exact check against the pure-JAX reference.
    out = jax.block_until_ready(pool(x, batch_data, attn))
    ref = jax.block_until_ready(reference(x, batch_data, attn, pool))
    assert out.shape == (G, D)
    assert np.allclose(np.asarray(out, dtype=np.float32), np.asarray(ref),
                       rtol=1e-4, atol=1e-5)

    # Native-bf16 path (the perf-relevant configuration): same kernels, no
    # wrapper casts, f32 accumulation inside.  Smoke/finiteness check only
    # (bf16 scores may legitimately change near-tie AFPS selections).
    out_bf16 = jax.block_until_ready(
        pool(x.astype(jnp.bfloat16), batch_data, attn.astype(jnp.bfloat16)))
    assert out_bf16.shape == (G, D)
    assert bool(jnp.all(jnp.isfinite(out_bf16.astype(jnp.float32))))

    print("KERNEL_OK")
</pallas_src>

<mosaic_0001>
module attributes {stable_mosaic.version = 11 : i64} {
  func.func @_score_kernel(%arg0: i32, %arg1: i32, %arg2: i32, %arg3: memref<1x1x32xf32, #tpu.memory_space<vmem>>, %arg4: memref<1x32x16xf32, #tpu.memory_space<vmem>>, %arg5: memref<1x1x16xf32, #tpu.memory_space<vmem>>) attributes {dimension_semantics = [#tpu.dimension_semantics<parallel>, #tpu.dimension_semantics<parallel>, #tpu.dimension_semantics<arbitrary>], iteration_bounds = array<i64: 2, 1, 1>, scalar_prefetch = 0 : i64, scratch_operands = 0 : i64, tpu.core_type = #tpu.core_type<tc>, window_params = [{transform_indices = @transform_0, window_bounds = array<i64: 1, 1, 32>}, {transform_indices = @transform_1, window_bounds = array<i64: 1, 32, 16>}, {transform_indices = @transform_2, window_bounds = array<i64: 1, 1, 16>}]} {
    %c0_i32 = arith.constant 0 : i32
    %0 = arith.cmpi eq, %arg2, %c0_i32 : i32
    %1 = arith.extui %0 : i1 to i32
    %c0_i32_0 = arith.constant 0 : i32
    %2 = arith.cmpi ne, %1, %c0_i32_0 : i32
    scf.if %2 {
      %cst_13 = arith.constant 0.000000e+00 : f32
      %11 = vector.broadcast %cst_13 : f32 to vector<1x1x16xf32>
      %c0_14 = arith.constant 0 : index
      %c0_15 = arith.constant 0 : index
      %c0_16 = arith.constant 0 : index
      %12 = vector.load %arg5[%c0_14, %c0_15, %c0_16] : memref<1x1x16xf32, #tpu.memory_space<vmem>>, vector<1x1x16xf32>
      tpu.vector_store %arg5[%c0_14, %c0_15, %c0_16], %11 {strides = array<i32>} : memref<1x1x16xf32, #tpu.memory_space<vmem>>, vector<1x1x16xf32>,
    } else {
    }
    %c0 = arith.constant 0 : index
    %c0_1 = arith.constant 0 : index
    %c0_2 = arith.constant 0 : index
    %3 = vector.load %arg3[%c0, %c0_1, %c0_2] : memref<1x1x32xf32, #tpu.memory_space<vmem>>, vector<1x1x32xf32>
    %c0_3 = arith.constant 0 : index
    %c0_4 = arith.constant 0 : index
    %c0_5 = arith.constant 0 : index
    %4 = vector.load %arg4[%c0_3, %c0_4, %c0_5] : memref<1x32x16xf32, #tpu.memory_space<vmem>>, vector<1x32x16xf32>
    "tpu.trace_start"() <{level = 10 : i32, message = "gom,gmn->gon"}> : () -> ()
    %cst = arith.constant dense<0.000000e+00> : vector<1x1x16xf32>
    %5 = tpu.matmul %3, %4, %cst {dimension_numbers = #tpu.dot_dimension_numbers<[2], [1], [1], [2], [0, 0, 0, 1, 1, 2], [0], [0]>, precision = #tpu.contract_precision<fp32>} : vector<1x1x32xf32>, vector<1x32x16xf32>, vector<1x1x16xf32> -> vector<1x1x16xf32>
    "tpu.trace_stop"() : () -> ()
    %c0_6 = arith.constant 0 : index
    %c0_7 = arith.constant 0 : index
    %c0_8 = arith.constant 0 : index
    %6 = vector.load %arg5[%c0_6, %c0_7, %c0_8] : memref<1x1x16xf32, #tpu.memory_space<vmem>>, vector<1x1x16xf32>
    %cst_9 = arith.constant 5.000000e-01 : f32
    %7 = vector.broadcast %cst_9 : f32 to vector<1x1x16xf32>
    %8 = arith.mulf %5, %7 : vector<1x1x16xf32>
    %9 = arith.addf %6, %8 : vector<1x1x16xf32>
    %c0_10 = arith.constant 0 : index
    %c0_11 = arith.constant 0 : index
    %c0_12 = arith.constant 0 : index
    %10 = vector.load %arg5[%c0_10, %c0_11, %c0_12] : memref<1x1x16xf32, #tpu.memory_space<vmem>>, vector<1x1x16xf32>
    tpu.vector_store %arg5[%c0_10, %c0_11, %c0_12], %9 {strides = array<i32>} : memref<1x1x16xf32, #tpu.memory_space<vmem>>, vector<1x1x16xf32>,
    return
  }
  func.func @transform_0(%arg0: i32, %arg1: i32, %arg2: i32) -> (i32, i32, i32) {
    %c0_i32 = arith.constant 0 : i32
    %c0_i32_0 = arith.constant 0 : i32
    return %arg0, %c0_i32, %arg2 : i32, i32, i32
  }
  func.func @transform_1(%arg0: i32, %arg1: i32, %arg2: i32) -> (i32, i32, i32) {
    %c0_i32 = arith.constant 0 : i32
    return %arg0, %arg2, %arg1 : i32, i32, i32
  }
  func.func @transform_2(%arg0: i32, %arg1: i32, %arg2: i32) -> (i32, i32, i32) {
    %c0_i32 = arith.constant 0 : i32
    %c0_i32_0 = arith.constant 0 : i32
    return %arg0, %c0_i32, %arg1 : i32, i32, i32
  }
}

</mosaic_0001>

<bundles_post_ra>
// kernel: tpu_custom_call.1
= control target key start
LH: loop header
LB: loop body
LE: loop exit
PB: predicated region body
PF: predicated region fallthrough
CT: control target
= control target key end

     0   :  { %7 = vsyncpa [#allocation3], 0  ;;  %s785_s0 = inlined_call_operand.vmem [shape: f32[2,1,32], index: 0, kind: input, shape index: {}]   ;;  %s786_s1 = inlined_call_operand.vmem [shape: f32[2,32,16], index: 1, kind: input, shape index: {}]   ;;  %s787_s2 = inlined_call_operand.hbm [shape: f32[2,1,16], index: 2, kind: output, shape index: {}]  }
   0x1   :  { %9 = vsyncpa [#allocation3 + $0x1], 0  ;;  %s683_s9 = smov 0   ;;  %s685_s10 = smov 0  }
   0x2   :  { %s687_s11 = smov 0   ;;  %s689_s12 = smov 0  }
   0x3   :  { %s691_s13 = smov 0   ;;  %s693_s14 = smov 0  }
   0x4 LB: > { %s521_s15 = sadd.s32 4294967295, %s665_s14   ;;  %s522_s16 = sadd.s32 4294967294, %s665_s14   ;;  %s665_s14 = sphi %s693_s14, %s15_s14   ;;  %s661_s13 = sphi %s691_s13, %s794_s13   ;;  %s657_s12 = sphi %s689_s12, %s793_s12   ;;  %s653_s11 = sphi %s687_s11, %s792_s11   ;;  %s649_s10 = sphi %s685_s10, %s791_s10   ;;  %s645_s9 = sphi %s683_s9, %s790_s9  }
   0x5   : > { %s34_s17 = sadd.s32 1, %s661_s13  ;;  %s101_s18 = sadd.s32 1, %s653_s11 }
   0x6   : > { %p36_p0 = scmp.ge.s32.totalorder %s34_s17, 2  ;;  %p111_p1 = scmp.ne.s32.totalorder %s653_s11, %s649_s10 }
   0x7   : > { %p112_p2 = scmp.eq.s32.totalorder %s521_s15, 1  ;;  %p117_p3 = scmp.ne.s32.totalorder %s649_s10, %s645_s9 }
   0x8   : > { %s796_s17 = smov (%p36_p0, %s34_s17), 0  ;;  %p118_p5 = scmp.eq.s32.totalorder %s522_s16, 1 }
   0x9   : > { %p723_p4 = por %p112_p2, %p111_p1  ;;  %s96_s20 = ssub.s32 %s661_s13, %s796_s17 }
   0xa   : > { %p525_p6 = scmp.ge.s32.totalorder %s665_s14, 1  ;;  %p99_p7 = scmp.eq.s32.totalorder %s96_s20, 0 }
   0xb   : > { %p730_p8 = por %p118_p5, %p117_p3  ;;  %p161_p9 = scmp.lt.s32.totalorder %s665_s14, 3 }
   0xc   : > { %s736_s22 = scalar_select %p99_p7, %s653_s11, %s101_s18  }
   0xd   : > { %p162_p10 = pnand %p525_p6, %p161_p9 }
   0xe   : > { %p195_p11 = scmp.lt.s32.totalorder (!%p162_p10), %s657_s12, 1  ;;  %s193_s3 = sand.u32 (!%p162_p10), 1, %s649_s10  }
   0xf   : > { %165 = sbr.rel (%p162_p10) target bundleno = 185 (0xb9), region = 28  ;;  %s194_s4 = scalar_lea.vmem (!%p162_p10), [#allocation2], %s193_s3 }
  0x10   : > { %s429_s7 = scalar_lea.hbm (!%p162_p10), %s787_s2, %s657_s12  ;;  %s431_s8 = sshll.u32 (!%p162_p10), %s194_s4, 4  ;;  %s432_s8 = int_to_ptr.vmem [resolvable:$true] %s431_s8 }
  0x11   : > { %s433_s15 = sshll.u32 (!%p162_p10), %s429_s7, 4  ;;  %s420_s16 = scalar_lea.sflag (!%p162_p10), [#allocation3], %s193_s3  ;;  %s434_s15 = int_to_ptr.hbm [resolvable:$true] %s433_s15 }
  0x12   : > { %s601_s18 = sshra.s32 (!%p162_p10), %s434_s15, 4  ;;  %s602_s18 = int_to_ptr.hbm [resolvable:$true] %s601_s18 }
  0x13   : > { %s603_s20 = scalar_lea.hbm (!%p162_p10), %s602_s18, 1  ;;  %p608_p1 = scmp.lt.s32.totalorder (!%p162_p10), %s602_s18, %s787_s2 }
  0x14   : > { %s196_s23 = scalar_select %p195_p11, %s657_s12, 1  ;;  %vm225_vm0 = vcmask 261120   ;;  %vm218_vm1 = vcmask 122880   ;;  %v667_v31 = vmov 0.0  }
  0x15   : > { %219 = vst.msk [vmem:[%s194_s4] sm:$0x1] %vm218_vm1, %v667_v31  ;;  %p604_p12 = scmp.ne.s32.totalorder %s602_s18, %s603_s20 }
  0x16   : > { %s530_s24 = sshll.u32 %s196_s23, 5  ;;  %s200_s27 = scalar_lea.vmem %s785_s0, %s196_s23 }
  0x17   : > { %s212_s30 = scalar_lea.vmem %s786_s1, %s530_s24  ;;  %v220_v0 = vld [vmem:[%s200_s27] sm:$0x1]  ;;  %p605_p13 = pnand %p604_p12, %p723_p4 }
  0x18   : > { %v224_v1 = vld [vmem:[%s212_s30 + $0x18] sm:$0xff]  ;;  %v223_v2 = vld [vmem:[%s212_s30 + $0x10] sm:$0xff]  ;;  %v222_v3 = vld [vmem:[%s212_s30 + $0x8] sm:$0xff]  ;;  %v227_v4 = vsel %vm225_vm0, %v220_v0, 0  ;;  %s607_s24 = scalar_lea.hbm %s787_s2, 2 }
  0x19   : > { %v241_v5 = vand.u32 4294901760, %v224_v1  ;;  %v243_v6 = vand.u32 4294901760, %v223_v2  ;;  %v245_v7 = vand.u32 4294901760, %v222_v3  ;;  %v221_v8 = vld [vmem:[%s212_s30] sm:$0xff]  ;;  %v249_v9 = vand.u32 4294901760, %v227_v4  ;;  %p606_p0 = pneg %p605_p13  ;;  %p609_p2 = scmp.lt.s32.totalorder %s607_s24, %s603_s20 }
  0x1a   : > { %v247_v10 = vand.u32 4294901760, %v221_v8 }
  0x1b   : > { %v271_v11 = vsub.f32 %v224_v1, %v241_v5  ;;  %242 = vmatpush.msra.mxu0 %v241_v5  ;;  %v277_v12 = vsub.f32 %v223_v2, %v243_v6  ;;  %342 = vmatpush.msra.mxu3 %v241_v5  ;;  %v283_v13 = vsub.f32 %v222_v3, %v245_v7  ;;  %p610_p3 = por %p609_p2, %p608_p1 }
  0x1c   : > { %v289_v14 = vsub.f32 %v221_v8, %v247_v10  ;;  %v250_v15 = vsub.f32 %v227_v4, %v249_v9  ;;  %v414_v43 = vld [vmem:[%s194_s4] sm:$0x1] }
  0x1d   : > { %313 = vmatpush.msra.mxu2 %v271_v11  ;;  %244 = vmatpush.msra.mxu0 %v243_v6  ;;  %v272_v16 = vand.u32 4294901760, %v271_v11  ;;  %v278_v17 = vand.u32 4294901760, %v277_v12  ;;  %v284_v18 = vand.u32 4294901760, %v283_v13  ;;  %p611_p5 = pnand %p610_p3, %p606_p0 }
  0x1e   : > { %344 = vmatpush.msra.mxu3 %v243_v6  ;;  %v251_v19 = vand.u32 4294901760, %v250_v15  ;;  %v290_v20 = vand.u32 4294901760, %v289_v14 }
  0x1f   : > { %316 = vmatpush.msra.mxu2 %v277_v12  ;;  %v273_v21 = vsub.f32 %v271_v11, %v272_v16  ;;  %246 = vmatpush.msra.mxu0 %v245_v7  ;;  %v279_v22 = vsub.f32 %v277_v12, %v278_v17  ;;  %v285_v23 = vsub.f32 %v283_v13, %v284_v18 }
  0x20   : > { %346 = vmatpush.msra.mxu3 %v245_v7  ;;  %v252_v24 = vsub.f32 %v250_v15, %v251_v19  ;;  %v291_v27 = vsub.f32 %v289_v14, %v290_v20 }
  0x21   : > { %v274_v25 = vand.u32 4294901760, %v273_v21  ;;  %319 = vmatpush.msra.mxu2 %v283_v13  ;;  %v280_v26 = vand.u32 4294901760, %v279_v22  ;;  %248 = vmatpush.msra.mxu0 %v247_v10  ;;  %v286_v29 = vand.u32 4294901760, %v285_v23 }
  0x22   : > { %348 = vmatpush.msra.mxu3 %v247_v10  ;;  %v253_v28 = vand.u32 4294901760, %v252_v24  ;;  %v292_v30 = vand.u32 4294901760, %v291_v27 }
  0x23   : > { %371 = vmatpush.msrb.mxu0 %v272_v16  ;;  %275 = vmatpush.msra.mxu1 %v274_v25 }
  0x24   : > { %322 = vmatpush.msra.mxu2 %v289_v14  ;;  %254 = vmatmul.f32.vlgmr.msra.gmra.mxu0 %v253_v28 }
  0x25   : > { %325 = vmatmul.f32.vlgmr.msra.gmra.mxu2 %v250_v15  ;;  %281 = vmatpush.msra.mxu1 %v280_v26 }
  0x26   : > { %352 = vmatmul.f32.vlgmr.msra.gmra.mxu3 %v251_v19  ;;  %375 = vmatpush.msrb.mxu0 %v278_v17 }
  0x27   : > { %287 = vmatpush.msra.mxu1 %v286_v29 }
  0x28   : > { %379 = vmatpush.msrb.mxu0 %v284_v18 }
  0x29   : > { %293 = vmatpush.msra.mxu1 %v292_v30 }
  0x2a   : > { %295 = vmatmul.f32.vlgmr.msra.gmra.mxu1 %v249_v9  ;;  %383 = vmatpush.msrb.mxu0 %v290_v20 }
  0x2b   : > { %402 = vmatpush.msrb.mxu1 %v241_v5 }
  0x2c   : > { %385 = vmatmul.f32.vlgmr.msrb.gmra.mxu0 %v249_v9 }
  0x2d   : > { %404 = vmatpush.msrb.mxu1 %v243_v6 }
  0x2f   : > { %406 = vmatpush.msrb.mxu1 %v245_v7 }
  0x31   : > { %408 = vmatpush.msrb.mxu1 %v247_v10 }
  0x32   : > { %410 = vmatmul.f32.vlgmr.msrb.gmra.mxu1 %v249_v9 }
  0xa1   : > { %v255_v32 = vpop.f32.mrf.mxu0 }
  0xa7   : > { %v296_v33 = vpop.f32.mrf.mxu1 }
  0xa8   : > { %v326_v34 = vpop.f32.mrf.mxu2  ;;  %v297_v35 = vadd.f32 %v296_v33, %v255_v32 }
  0xa9   : > { %v353_v36 = vpop.f32.mrf.mxu3  ;;  %v386_v38 = vpop.f32.mrf.mxu0 }
  0xaa   : > { %v327_v37 = vadd.f32 %v326_v34, %v297_v35 }
  0xac   : > { %v354_v39 = vadd.f32 %v353_v36, %v327_v37 }
  0xae   : > { %v387_v40 = vadd.f32 %v386_v38, %v354_v39 }
  0xaf   : > { %v411_v41 = vpop.f32.mrf.mxu1 }
  0xb0   : > { %v412_v42 = vadd.f32 %v411_v41, %v387_v40 }
  0xb2   : > { %v415_v44 = vmul.f32 0.5, %v412_v42 }
  0xb4   : > { %v416_v45 = vadd.f32 %v415_v44, %v414_v43 }
  0xb6   : > { %418 = vst.msk [vmem:[%s194_s4] sm:$0x1] %vm218_vm1, %v416_v45 }
  0xb7   : > { %614 = shalt.err (!%p611_p5)
}
  0xb8   : > { %531 = dma.vmem_to_hbm [thread:$0]  (%p723_p4), %s432_s8, 16, %s434_s15, %s420_s16  }
  0xb9 PF: > { %p537_p6 = scmp.ge.s32.totalorder %s665_s14, 2  ;;  %s445_s27 = sand.u32 1, %s645_s9  }
  0xba   : > { %s446_s28 = scalar_lea.sflag [#allocation3], %s445_s27 }
  0xbb   : > { %p534_p7 = pnand %p537_p6, %p730_p8 }
  0xbd   : > { %p535_p9 = pneg %p534_p7 }
  0xbf   : > { %640 = dma.done.wait (%p535_p9), %s446_s28, 16  }
  0xc0   : > { %642 = vsyncadd (%p535_p9), %s446_s28, 4294967280  ;;  %s15_s14 = sadd.s32 1, %s665_s14   ;;  %s790_s9 = smov %s649_s10 }
  0xc1   : > { %p12_p10 = scmp.ge.s32.totalorder %s15_s14, 4   ;;  %s791_s10 = smov %s653_s11 }
  0xc2   : > { %s792_s11 = smov %s736_s22  ;;  %s793_s12 = smov %s661_s13 }
  0xc3   : > { %s794_s13 = smov %s796_s17  ;;  %14 = sbr.rel (!%p12_p10) target bundleno = 4 (0x4), region = 70 }
  0xc8   :  { %451 = vsyncpa [#allocation3], 1 }
  0xc9   :  { %453 = vsyncpa [#allocation3 + $0x1], 1 }

</bundles_post_ra>
